<compile_context>
chip_gen: v7x
topology: tpu7x:2x2x1
jax: 0.10.0
libtpu: 0.0.40
codegen_flags: <defaults>
</compile_context>

<pallas_src>
import functools

import jax
import jax.numpy as jnp
import numpy as np
from jax import lax
from jax.experimental import pallas as pl
from jax.experimental.pallas import tpu as pltpu


def _residual_block_kernel(H, W, C,
                           x_ref, w0_ref, b0_ref, w1_ref, b1_ref,
                           o_ref, hpad_ref):
    """One grid step = NB images.

    x_ref    : (NB, H+2, W*C)  H-halo-padded input rows (pre-relu, halo rows = 0)
    w*_ref   : (3*W*C, W*C)    block-banded conv weights (ky-major rows)
    b*_ref   : (1, W*C)        bias tiled over the fused (w, c) lane axis
    o_ref    : (NB, H, W*C)
    hpad_ref : (NB, H+2, W*C)  VMEM scratch for the re-padded intermediate
    """
    NB = x_ref.shape[0]
    WC = W * C

    def conv3x3(apad, w_ref, b_ref):
        # apad: (NB, H+2, WC) with zero halo rows.  The 3 ky taps are cheap
        # row-offset slices; kx taps + channel contraction live in the banded
        # weight, so the whole conv is a single K = 3*WC matmul.
        taps = [apad[:, ky:ky + H, :].reshape(NB * H, WC) for ky in range(3)]
        patches = jnp.concatenate(taps, axis=-1)              # (NB*H, 3*WC)
        out = jnp.dot(patches, w_ref[...],
                      preferred_element_type=jnp.float32)     # (NB*H, WC)
        return out + b_ref[...]                               # bias (1, WC)

    x = x_ref[...]                                            # (NB, H+2, WC)
    h = conv3x3(jnp.maximum(x, 0.0), w0_ref, b0_ref)          # relu -> conv0

    # relu, then re-insert the zero H-halo rows for the second conv.
    hpad_ref[...] = jnp.zeros_like(hpad_ref)
    hpad_ref[:, pl.ds(1, H), :] = jnp.maximum(h, 0.0).reshape(NB, H, WC)
    h = conv3x3(hpad_ref[...], w1_ref, b1_ref)                # relu -> conv1

    res = x[:, 1:1 + H, :]                                    # original input
    o_ref[...] = (h.reshape(NB, H, WC) + res).astype(o_ref.dtype)


def _band_weight(w, W):
    """OIHW (O, I, 3, 3) conv weight -> block-banded (3*W*I, W*O) matmul weight.

    Row index = ky*(W*I) + wi*I + ci   (ky tap, input column, input channel)
    Col index = wo*O + co              (output column, output channel)
    Entry     = w[co, ci, ky, wi - wo + 1]  when |wi - wo| <= 1, else 0.
    Out-of-range wi are simply omitted, which realizes the left/right "same"
    zero padding without any padded activation columns.
    """
    O, I, KH, KW = w.shape
    wb = jnp.zeros((KH, W, I, W, O), jnp.float32)
    wo = np.arange(W)
    for ky in range(KH):
        for kx in range(KW):
            wi = wo + kx - 1
            valid = (wi >= 0) & (wi < W)
            wb = wb.at[ky, wi[valid], :, wo[valid], :].set(
                jnp.transpose(w[:, :, ky, kx]).astype(jnp.float32))
    return wb.reshape(KH * W * I, W * O)


def residual_block_forward(x_nchw, w0, b0, w1, b1):
    """Matches ResidualBlock.forward; x_nchw (N, C, H, W), conv weights OIHW."""
    N, C, H, W = x_nchw.shape
    Hp, WC = H + 2, W * C

    # --- glue: NCHW -> (N, H+2, W*C) with zero H-halo rows -------------------
    x_rows = jnp.transpose(x_nchw, (0, 2, 3, 1)).reshape(N, H, WC)
    x_hpad = jnp.pad(x_rows.astype(jnp.float32), ((0, 0), (1, 1), (0, 0)))

    w0b = _band_weight(w0, W)
    w1b = _band_weight(w1, W)
    b0r = jnp.tile(b0.astype(jnp.float32), W).reshape(1, WC)
    b1r = jnp.tile(b1.astype(jnp.float32), W).reshape(1, WC)

    NB = N                        # whole batch in one grid step (matmul M = N*H)
    kernel = functools.partial(_residual_block_kernel, H, W, C)
    out = pl.pallas_call(
        kernel,
        out_shape=jax.ShapeDtypeStruct((N, H, WC), jnp.float32),
        grid=(N // NB,),
        in_specs=[
            pl.BlockSpec((NB, Hp, WC), lambda i: (i, 0, 0)),
            pl.BlockSpec((3 * WC, WC), lambda i: (0, 0)),
            pl.BlockSpec((1, WC), lambda i: (0, 0)),
            pl.BlockSpec((3 * WC, WC), lambda i: (0, 0)),
            pl.BlockSpec((1, WC), lambda i: (0, 0)),
        ],
        out_specs=pl.BlockSpec((NB, H, WC), lambda i: (i, 0, 0)),
        scratch_shapes=[pltpu.VMEM((NB, Hp, WC), jnp.float32)],
        compiler_params=pltpu.CompilerParams(
            dimension_semantics=("parallel",)),
    )(x_hpad, w0b, b0r, w1b, b1r)

    # --- glue: back to NCHW --------------------------------------------------
    return jnp.transpose(out.reshape(N, H, W, C), (0, 3, 1, 2))


if __name__ == "__main__":
    key = jax.random.PRNGKey(0)
    N, C, H, W = 2, 4, 16, 16
    k1, k2, k3, k4, k5 = jax.random.split(key, 5)

    x = jax.random.normal(k1, (N, C, H, W), jnp.float32)
    # deterministic synthetic params, PyTorch-Conv2d-like uniform init
    bound = 1.0 / np.sqrt(C * 3 * 3)
    w0 = jax.random.uniform(k2, (C, C, 3, 3), jnp.float32, -bound, bound)
    b0 = jax.random.uniform(k3, (C,), jnp.float32, -bound, bound)
    w1 = jax.random.uniform(k4, (C, C, 3, 3), jnp.float32, -bound, bound)
    b1 = jax.random.uniform(k5, (C,), jnp.float32, -bound, bound)

    out = jax.block_until_ready(residual_block_forward(x, w0, b0, w1, b1))

    # pure-JAX reference with the exact PyTorch semantics
    def ref(x, w0, b0, w1, b1):
        def conv(v, w, b):
            y = lax.conv_general_dilated(
                v, w, (1, 1), "SAME",
                dimension_numbers=("NCHW", "OIHW", "NCHW"))
            return y + b[None, :, None, None]
        h = conv(jax.nn.relu(x), w0, b0)
        h = conv(jax.nn.relu(h), w1, b1)
        return h + x

    expected = jax.block_until_ready(ref(x, w0, b0, w1, b1))
    assert out.shape == (N, C, H, W) and out.dtype == jnp.float32
    np.testing.assert_allclose(np.asarray(out), np.asarray(expected),
                               rtol=1e-4, atol=1e-4)
    print("KERNEL_OK")
</pallas_src>

<mosaic_0001>
module attributes {stable_mosaic.version = 11 : i64} {
  func.func @_residual_block_kernel(%arg0: i32, %arg1: memref<2x18x64xf32, #tpu.memory_space<vmem>>, %arg2: memref<192x64xf32, #tpu.memory_space<vmem>>, %arg3: memref<1x64xf32, #tpu.memory_space<vmem>>, %arg4: memref<192x64xf32, #tpu.memory_space<vmem>>, %arg5: memref<1x64xf32, #tpu.memory_space<vmem>>, %arg6: memref<2x16x64xf32, #tpu.memory_space<vmem>>, %arg7: memref<2x18x64xf32, #tpu.memory_space<vmem>>) attributes {dimension_semantics = [#tpu.dimension_semantics<parallel>], iteration_bounds = array<i64: 1>, scalar_prefetch = 0 : i64, scratch_operands = 1 : i64, tpu.core_type = #tpu.core_type<tc>, window_params = [{transform_indices = @transform_0, window_bounds = array<i64: 2, 18, 64>}, {pipeline_mode = #tpu.pipeline_mode<synchronous>, transform_indices = @transform_1, window_bounds = array<i64: 192, 64>}, {pipeline_mode = #tpu.pipeline_mode<synchronous>, transform_indices = @transform_2, window_bounds = array<i64: 1, 64>}, {pipeline_mode = #tpu.pipeline_mode<synchronous>, transform_indices = @transform_3, window_bounds = array<i64: 192, 64>}, {pipeline_mode = #tpu.pipeline_mode<synchronous>, transform_indices = @transform_4, window_bounds = array<i64: 1, 64>}, {transform_indices = @transform_5, window_bounds = array<i64: 2, 16, 64>}]} {
    %c0 = arith.constant 0 : index
    %c0_0 = arith.constant 0 : index
    %c0_1 = arith.constant 0 : index
    %0 = vector.load %arg1[%c0, %c0_0, %c0_1] : memref<2x18x64xf32, #tpu.memory_space<vmem>>, vector<2x18x64xf32>
    %cst = arith.constant 0.000000e+00 : f32
    %1 = vector.broadcast %cst : f32 to vector<2x18x64xf32>
    %2 = arith.maximumf %0, %1 : vector<2x18x64xf32>
    %3 = vector.extract_strided_slice %2 {offsets = [0, 0, 0], sizes = [2, 16, 64], strides = [1, 1, 1]} : vector<2x18x64xf32> to vector<2x16x64xf32>
    %4 = vector.shape_cast %3 : vector<2x16x64xf32> to vector<32x64xf32>
    %5 = vector.extract_strided_slice %2 {offsets = [0, 1, 0], sizes = [2, 16, 64], strides = [1, 1, 1]} : vector<2x18x64xf32> to vector<2x16x64xf32>
    %6 = vector.shape_cast %5 : vector<2x16x64xf32> to vector<32x64xf32>
    %7 = vector.extract_strided_slice %2 {offsets = [0, 2, 0], sizes = [2, 16, 64], strides = [1, 1, 1]} : vector<2x18x64xf32> to vector<2x16x64xf32>
    %8 = vector.shape_cast %7 : vector<2x16x64xf32> to vector<32x64xf32>
    %9 = tpu.concatenate %4, %6, %8 in 1 : vector<32x64xf32>, vector<32x64xf32>, vector<32x64xf32> -> vector<32x192xf32>
    %c0_2 = arith.constant 0 : index
    %c0_3 = arith.constant 0 : index
    %10 = vector.load %arg2[%c0_2, %c0_3] : memref<192x64xf32, #tpu.memory_space<vmem>>, vector<192x64xf32>
    %cst_4 = arith.constant dense<0.000000e+00> : vector<32x64xf32>
    %11 = tpu.matmul %9, %10, %cst_4 {dimension_numbers = #tpu.dot_dimension_numbers<[1], [0], [0], [1], [0, 0, 1, 1], [], []>} : vector<32x192xf32>, vector<192x64xf32>, vector<32x64xf32> -> vector<32x64xf32>
    %c0_5 = arith.constant 0 : index
    %c0_6 = arith.constant 0 : index
    %12 = vector.load %arg3[%c0_5, %c0_6] : memref<1x64xf32, #tpu.memory_space<vmem>>, vector<1x64xf32>
    %13 = vector.broadcast %12 : vector<1x64xf32> to vector<32x64xf32>
    %14 = arith.addf %11, %13 : vector<32x64xf32>
    %cst_7 = arith.constant 0.000000e+00 : f32
    %15 = vector.broadcast %cst_7 : f32 to vector<2x18x64xf32>
    %c0_8 = arith.constant 0 : index
    %c0_9 = arith.constant 0 : index
    %c0_10 = arith.constant 0 : index
    %16 = vector.load %arg7[%c0_8, %c0_9, %c0_10] : memref<2x18x64xf32, #tpu.memory_space<vmem>>, vector<2x18x64xf32>
    tpu.vector_store %arg7[%c0_8, %c0_9, %c0_10], %15 {strides = array<i32>} : memref<2x18x64xf32, #tpu.memory_space<vmem>>, vector<2x18x64xf32>,
    %cst_11 = arith.constant 0.000000e+00 : f32
    %17 = vector.broadcast %cst_11 : f32 to vector<32x64xf32>
    %18 = arith.maximumf %14, %17 : vector<32x64xf32>
    %19 = vector.shape_cast %18 : vector<32x64xf32> to vector<2x16x64xf32>
    %c0_12 = arith.constant 0 : index
    %c1 = arith.constant 1 : index
    %c0_13 = arith.constant 0 : index
    %20 = vector.load %arg7[%c0_12, %c1, %c0_13] : memref<2x18x64xf32, #tpu.memory_space<vmem>>, vector<2x16x64xf32>
    tpu.vector_store %arg7[%c0_12, %c1, %c0_13], %19 {strides = array<i32>} : memref<2x18x64xf32, #tpu.memory_space<vmem>>, vector<2x16x64xf32>,
    %c0_14 = arith.constant 0 : index
    %c0_15 = arith.constant 0 : index
    %c0_16 = arith.constant 0 : index
    %21 = vector.load %arg7[%c0_14, %c0_15, %c0_16] : memref<2x18x64xf32, #tpu.memory_space<vmem>>, vector<2x18x64xf32>
    %22 = vector.extract_strided_slice %21 {offsets = [0, 0, 0], sizes = [2, 16, 64], strides = [1, 1, 1]} : vector<2x18x64xf32> to vector<2x16x64xf32>
    %23 = vector.shape_cast %22 : vector<2x16x64xf32> to vector<32x64xf32>
    %24 = vector.extract_strided_slice %21 {offsets = [0, 1, 0], sizes = [2, 16, 64], strides = [1, 1, 1]} : vector<2x18x64xf32> to vector<2x16x64xf32>
    %25 = vector.shape_cast %24 : vector<2x16x64xf32> to vector<32x64xf32>
    %26 = vector.extract_strided_slice %21 {offsets = [0, 2, 0], sizes = [2, 16, 64], strides = [1, 1, 1]} : vector<2x18x64xf32> to vector<2x16x64xf32>
    %27 = vector.shape_cast %26 : vector<2x16x64xf32> to vector<32x64xf32>
    %28 = tpu.concatenate %23, %25, %27 in 1 : vector<32x64xf32>, vector<32x64xf32>, vector<32x64xf32> -> vector<32x192xf32>
    %c0_17 = arith.constant 0 : index
    %c0_18 = arith.constant 0 : index
    %29 = vector.load %arg4[%c0_17, %c0_18] : memref<192x64xf32, #tpu.memory_space<vmem>>, vector<192x64xf32>
    %cst_19 = arith.constant dense<0.000000e+00> : vector<32x64xf32>
    %30 = tpu.matmul %28, %29, %cst_19 {dimension_numbers = #tpu.dot_dimension_numbers<[1], [0], [0], [1], [0, 0, 1, 1], [], []>} : vector<32x192xf32>, vector<192x64xf32>, vector<32x64xf32> -> vector<32x64xf32>
    %c0_20 = arith.constant 0 : index
    %c0_21 = arith.constant 0 : index
    %31 = vector.load %arg5[%c0_20, %c0_21] : memref<1x64xf32, #tpu.memory_space<vmem>>, vector<1x64xf32>
    %32 = vector.broadcast %31 : vector<1x64xf32> to vector<32x64xf32>
    %33 = arith.addf %30, %32 : vector<32x64xf32>
    %34 = vector.extract_strided_slice %0 {offsets = [0, 1, 0], sizes = [2, 16, 64], strides = [1, 1, 1]} : vector<2x18x64xf32> to vector<2x16x64xf32>
    %35 = vector.shape_cast %33 : vector<32x64xf32> to vector<2x16x64xf32>
    %36 = arith.addf %35, %34 : vector<2x16x64xf32>
    %c0_22 = arith.constant 0 : index
    %c0_23 = arith.constant 0 : index
    %c0_24 = arith.constant 0 : index
    %37 = vector.load %arg6[%c0_22, %c0_23, %c0_24] : memref<2x16x64xf32, #tpu.memory_space<vmem>>, vector<2x16x64xf32>
    tpu.vector_store %arg6[%c0_22, %c0_23, %c0_24], %36 {strides = array<i32>} : memref<2x16x64xf32, #tpu.memory_space<vmem>>, vector<2x16x64xf32>,
    return
  }
  func.func @transform_0(%arg0: i32) -> (i32, i32, i32) {
    %c0_i32 = arith.constant 0 : i32
    %c0_i32_0 = arith.constant 0 : i32
    %c0_i32_1 = arith.constant 0 : i32
    return %arg0, %c0_i32, %c0_i32_0 : i32, i32, i32
  }
  func.func @transform_1(%arg0: i32) -> (i32, i32) {
    %c0_i32 = arith.constant 0 : i32
    %c0_i32_0 = arith.constant 0 : i32
    %c0_i32_1 = arith.constant 0 : i32
    return %c0_i32, %c0_i32_0 : i32, i32
  }
  func.func @transform_2(%arg0: i32) -> (i32, i32) {
    %c0_i32 = arith.constant 0 : i32
    %c0_i32_0 = arith.constant 0 : i32
    %c0_i32_1 = arith.constant 0 : i32
    return %c0_i32, %c0_i32_0 : i32, i32
  }
  func.func @transform_3(%arg0: i32) -> (i32, i32) {
    %c0_i32 = arith.constant 0 : i32
    %c0_i32_0 = arith.constant 0 : i32
    %c0_i32_1 = arith.constant 0 : i32
    return %c0_i32, %c0_i32_0 : i32, i32
  }
  func.func @transform_4(%arg0: i32) -> (i32, i32) {
    %c0_i32 = arith.constant 0 : i32
    %c0_i32_0 = arith.constant 0 : i32
    %c0_i32_1 = arith.constant 0 : i32
    return %c0_i32, %c0_i32_0 : i32, i32
  }
  func.func @transform_5(%arg0: i32) -> (i32, i32, i32) {
    %c0_i32 = arith.constant 0 : i32
    %c0_i32_0 = arith.constant 0 : i32
    %c0_i32_1 = arith.constant 0 : i32
    return %arg0, %c0_i32, %c0_i32_0 : i32, i32, i32
  }
}

</mosaic_0001>

<bundles_post_ra>
// kernel: tpu_custom_call.1
= control target key start
LH: loop header
LB: loop body
LE: loop exit
PB: predicated region body
PF: predicated region fallthrough
CT: control target
= control target key end

     0   :  { %vm39_vm0 = vcmask 1046528   ;;  %v545_v11 = vmov 0.0|0.0   ;;  %s546_s12 = smov 64   ;;  %vm50_vm1 = vcmask 1045504   ;;  %vm73_vm2 = vcmask 523264   ;;  %s889_s0 = inlined_call_operand.vmem [shape: f32[2,18,64], index: 0, kind: input, shape index: {}]   ;;  %s890_s1 = inlined_call_operand.vmem [shape: f32[192,64], index: 1, kind: input, shape index: {}]   ;;  %s891_s2 = inlined_call_operand.vmem [shape: f32[1,64], index: 2, kind: input, shape index: {}]   ;;  %s892_s3 = inlined_call_operand.vmem [shape: f32[192,64], index: 3, kind: input, shape index: {}]   ;;  %s893_s4 = inlined_call_operand.vmem [shape: f32[1,64], index: 4, kind: input, shape index: {}]   ;;  %s894_s5 = inlined_call_operand.hbm [shape: f32[2,16,64], index: 5, kind: output, shape index: {}]  }
   0x1   :  { %v584_v0 = vld [vmem:[%s889_s0] sm:$0xff]  ;;  %v589_v1 = vld [vmem:[%s889_s0 + $0x8] sm:$0xff]  ;;  %v594_v2 = vld [vmem:[%s889_s0 + $0x10] sm:$0x3]  ;;  %443 = vmatprep.subr.bf16.mxu0 %v545_v11  ;;  %479 = vmatprep.subr.bf16.mxu1 %v545_v11 }
   0x2   :  { %v597_v3 = vmax.f32 %v584_v0, 0.0  ;;  %v600_v4 = vmax.f32 %v589_v1, 0.0  ;;  %v29_v5 = vmax.f32 %v594_v2, 0.0  ;;  %v606_v6 = vld [vmem:[%s889_s0 + $0x18] sm:$0xff]  ;;  %v611_v7 = vld [vmem:[%s889_s0 + $0x20] sm:$0xff]  ;;  %v79_v13 = vld [vmem:[%s890_s1 + $0x8] sm:$0xff] }
   0x3   :  { %v614_v8 = vmax.f32 %v606_v6, 0.0  ;;  %v617_v9 = vmax.f32 %v611_v7, 0.0  ;;  %v622_v10 = vld [vmem:[%s889_s0 + $0x28] sm:$0x3]  ;;  %v78_v12 = vld [vmem:[%s890_s1] sm:$0xff]  ;;  %v80_v18 = vld [vmem:[%s890_s1 + $0x10] sm:$0xff] }
   0x4   :  { %v40_v14 = vrot.slane %v597_v3, 1  ;;  %v41_v15 = vrot.slane %v600_v4, 1  ;;  %v43_v16 = vrot.slane %v29_v5, 1  ;;  %v32_v17 = vmax.f32 %v622_v10, 0.0  ;;  %v81_v19 = vld [vmem:[%s890_s1 + $0x18] sm:$0xff]  ;;  %v82_v28 = vld [vmem:[%s890_s1 + $0x20] sm:$0xff] }
   0x5   :  { %v45_v20 = vrot.slane %v614_v8, 1  ;;  %v46_v21 = vrot.slane %v617_v9, 1  ;;  %v444_v22 = vpack.c.bf16 %v79_v13, %v78_v12  ;;  %v447_v26 = vpack.c.bf16 %v81_v19, %v80_v18  ;;  %v83_v29 = vld [vmem:[%s890_s1 + $0x28] sm:$0xff]  ;;  %v84_v37 = vld [vmem:[%s890_s1 + $0x30] sm:$0xff]  ;;  %v85_v38 = vld [vmem:[%s890_s1 + $0x38] sm:$0xff] }
   0x6   :  { %v42_v23 = vsel %vm39_vm0, %v40_v14, %v41_v15  ;;  %v48_v24 = vrot.slane %v32_v17, 1  ;;  %v44_v27 = vsel %vm39_vm0, %v41_v15, %v43_v16  ;;  %v51_v30 = vrot.slane %v597_v3, 2 }
   0x7   :  { %61 = vrot.lane.b32.xlu0 %v42_v23, %s546_s12  ;;  %v47_v25 = vsel %vm39_vm0, %v45_v20, %v46_v21  ;;  %445 = vmatpush1.bf16.msra.mxu0 %v444_v22  ;;  %v52_v31 = vrot.slane %v600_v4, 2  ;;  %v54_v33 = vrot.slane %v29_v5, 2  ;;  %v450_v35 = vpack.c.bf16 %v83_v29, %v82_v28 }
   0x8   :  { %65 = vrot.lane.b32.xlu1 %v47_v25, %s546_s12  ;;  %446 = vmatprep.subr.bf16.mxu0 %v545_v11  ;;  %v49_v32 = vsel %vm39_vm0, %v46_v21, %v48_v24 }
   0x9   :  { %v53_v34 = vsel %vm50_vm1, %v51_v30, %v52_v31  ;;  %v55_v36 = vsel %vm50_vm1, %v52_v31, %v54_v33 }
   0xb   :  { %63 = vrot.lane.b32.xlu0 %v44_v27, %s546_s12  ;;  %448 = vmatpush1.bf16.msra.mxu0 %v447_v26 }
   0xc   :  { %67 = vrot.lane.b32.xlu1 %v49_v32, %s546_s12  ;;  %449 = vmatprep.subr.bf16.mxu0 %v545_v11 }
   0xd   :  { %10 = vsyncpa [#allocation4], 0  ;;  %434 = vmatprep.mubr.msk.f32.mxu0 %vm73_vm2, %v53_v34  ;;  %v453_v39 = vpack.c.bf16 %v85_v38, %v84_v37  ;;  %v86_v40 = vld [vmem:[%s890_s1 + $0x40] sm:$0xff]  ;;  %v87_v41 = vld [vmem:[%s890_s1 + $0x48] sm:$0xff]  ;;  %v56_v12 = vrot.slane %v614_v8, 2  ;;  %v57_v13 = vrot.slane %v617_v9, 2 }
   0xe   :  { %v456_v42 = vpack.c.bf16 %v87_v41, %v86_v40  ;;  %v88_v43 = vld [vmem:[%s890_s1 + $0x50] sm:$0xff]  ;;  %v89_v44 = vld [vmem:[%s890_s1 + $0x58] sm:$0xff]  ;;  %v90_v46 = vld [vmem:[%s890_s1 + $0x60] sm:$0xff]  ;;  %v59_v19 = vrot.slane %v32_v17, 2  ;;  %v547_v17 = vmov 0.0   ;;  %vm204_vm3 = vcmask 517120  }
   0xf   :  { %451 = vmatpush1.bf16.msra.mxu0 %v450_v35  ;;  %v459_v45 = vpack.c.bf16 %v89_v44, %v88_v43  ;;  %v91_v47 = vld [vmem:[%s890_s1 + $0x68] sm:$0xff]  ;;  %v92_v49 = vld [vmem:[%s890_s1 + $0x70] sm:$0xff]  ;;  %v93_v50 = vld [vmem:[%s890_s1 + $0x78] sm:$0xff]  ;;  %v58_v18 = vsel %vm50_vm1, %v56_v12, %v57_v13  ;;  %202 = vst.msk [vmem:[#allocation2] sm:$0xff] %vm73_vm2, %v547_v17 }
  0x10   :  { %452 = vmatprep.subr.bf16.mxu0 %v545_v11  ;;  %v462_v48 = vpack.c.bf16 %v91_v47, %v90_v46  ;;  %v465_v51 = vpack.c.bf16 %v93_v50, %v92_v49  ;;  %v94_v52 = vld [vmem:[%s890_s1 + $0x80] sm:$0xff]  ;;  %v95_v53 = vld [vmem:[%s890_s1 + $0x88] sm:$0xff]  ;;  %v96_v55 = vld [vmem:[%s890_s1 + $0x90] sm:$0xff]  ;;  %v60_v22 = vsel %vm50_vm1, %v57_v13, %v59_v19  ;;  %203 = vst.msk [vmem:[#allocation2 + $0x8] sm:$0xff] %vm73_vm2, %v547_v17 }
  0x11   :  { %v468_v54 = vpack.c.bf16 %v95_v53, %v94_v52  ;;  %v97_v56 = vld [vmem:[%s890_s1 + $0x98] sm:$0xff]  ;;  %v98_v58 = vld [vmem:[%s890_s1 + $0xa0] sm:$0xff]  ;;  %v99_v59 = vld [vmem:[%s890_s1 + $0xa8] sm:$0xff]  ;;  %206 = vst.msk [vmem:[#allocation2 + $0x18] sm:$0xff] %vm73_vm2, %v547_v17 }
  0x12   :  { %v471_v57 = vpack.c.bf16 %v97_v56, %v96_v55  ;;  %v474_v60 = vpack.c.bf16 %v99_v59, %v98_v58  ;;  %v100_v61 = vld [vmem:[%s890_s1 + $0xb0] sm:$0xff]  ;;  %v101_v62 = vld [vmem:[%s890_s1 + $0xb8] sm:$0xff]  ;;  %207 = vst.msk [vmem:[#allocation2 + $0x20] sm:$0xff] %vm73_vm2, %v547_v17  ;;  %v269_v27 = vld [vmem:[%s892_s3 + $0x20] sm:$0xff] }
  0x13   :  { %454 = vmatpush1.bf16.msra.mxu0 %v453_v39  ;;  %v477_v63 = vpack.c.bf16 %v101_v62, %v100_v61  ;;  %205 = vst.msk [vmem:[#allocation2 + $0x10] sm:$0x3] %vm204_vm3, %v547_v17  ;;  %208 = vst.msk [vmem:[#allocation2 + $0x28] sm:$0x3] %vm204_vm3, %v547_v17  ;;  %v268_v25 = vld [vmem:[%s892_s3 + $0x18] sm:$0xff]  ;;  %v270_v28 = vld [vmem:[%s892_s3 + $0x28] sm:$0xff] }
  0x14   :  { %455 = vmatprep.subr.bf16.mxu0 %v545_v11  ;;  %v486_v29 = vpack.c.bf16 %v270_v28, %v269_v27  ;;  %v271_v30 = vld [vmem:[%s892_s3 + $0x30] sm:$0xff]  ;;  %v272_v31 = vld [vmem:[%s892_s3 + $0x38] sm:$0xff]  ;;  %v273_v33 = vld [vmem:[%s892_s3 + $0x40] sm:$0xff] }
  0x15   :  { %v489_v32 = vpack.c.bf16 %v272_v31, %v271_v30  ;;  %v274_v34 = vld [vmem:[%s892_s3 + $0x48] sm:$0xff]  ;;  %v276_v37 = vld [vmem:[%s892_s3 + $0x58] sm:$0xff]  ;;  %v277_v39 = vld [vmem:[%s892_s3 + $0x60] sm:$0xff] }
  0x16   :  { %v492_v35 = vpack.c.bf16 %v274_v34, %v273_v33  ;;  %v278_v40 = vld [vmem:[%s892_s3 + $0x68] sm:$0xff]  ;;  %v280_v43 = vld [vmem:[%s892_s3 + $0x78] sm:$0xff] }
  0x17   :  { %457 = vmatpush1.bf16.msra.mxu0 %v456_v42  ;;  %v498_v41 = vpack.c.bf16 %v278_v40, %v277_v39  ;;  %v279_v42 = vld [vmem:[%s892_s3 + $0x70] sm:$0xff]  ;;  %v282_v46 = vld [vmem:[%s892_s3 + $0x88] sm:$0xff]  ;;  %v284_v49 = vld [vmem:[%s892_s3 + $0x98] sm:$0xff] }
  0x18   :  { %458 = vmatprep.subr.bf16.mxu0 %v545_v11  ;;  %v501_v44 = vpack.c.bf16 %v280_v43, %v279_v42  ;;  %v286_v52 = vld [vmem:[%s892_s3 + $0xa8] sm:$0xff]  ;;  %v288_v55 = vld [vmem:[%s892_s3 + $0xb8] sm:$0xff] }
  0x1b   :  { %460 = vmatpush1.bf16.msra.mxu0 %v459_v45  ;;  %v281_v45 = vld [vmem:[%s892_s3 + $0x80] sm:$0xff] }
  0x1c   :  { %461 = vmatprep.subr.bf16.mxu0 %v545_v11  ;;  %v504_v47 = vpack.c.bf16 %v282_v46, %v281_v45 }
  0x1f   :  { %463 = vmatpush1.bf16.msra.mxu0 %v462_v48  ;;  %v283_v48 = vld [vmem:[%s892_s3 + $0x90] sm:$0xff] }
  0x20   :  { %464 = vmatprep.subr.bf16.mxu0 %v545_v11  ;;  %v507_v50 = vpack.c.bf16 %v284_v49, %v283_v48 }
  0x23   :  { %466 = vmatpush1.bf16.msra.mxu0 %v465_v51  ;;  %v285_v51 = vld [vmem:[%s892_s3 + $0xa0] sm:$0xff] }
  0x24   :  { %467 = vmatprep.subr.bf16.mxu0 %v545_v11  ;;  %v510_v53 = vpack.c.bf16 %v286_v52, %v285_v51  ;;  %v396_v51 = vrot.slane %v589_v1, 1  ;;  %v438_v52 = vld [vmem:[%s893_s4] ss:$0 sm:$0xff]  ;;  %s548_s4 = smov [#allocation3]  }
  0x27   :  { %469 = vmatpush1.bf16.msra.mxu0 %v468_v54  ;;  %v287_v54 = vld [vmem:[%s892_s3 + $0xb0] sm:$0xff] }
  0x28   :  { %470 = vmatprep.subr.bf16.mxu0 %v545_v11  ;;  %v513_v56 = vpack.c.bf16 %v288_v55, %v287_v54  ;;  %v398_v55 = vrot.slane %v594_v2, 1  ;;  %v403_v2 = vrot.slane %v622_v10, 1 }
  0x2b   :  { %472 = vmatpush1.bf16.msra.mxu0 %v471_v57  ;;  %v433_v57 = vld [vmem:[%s891_s2] ss:$0 sm:$0xff] }
  0x2c   :  { %473 = vmatprep.subr.bf16.mxu0 %v545_v11 }
  0x2f   :  { %475 = vmatpush1.bf16.msra.mxu0 %v474_v60 }
  0x30   :  { %476 = vmatprep.subr.bf16.mxu0 %v545_v11 }
  0x33   :  { %478 = vmatpush1.bf16.msra.mxu0 %v477_v63 }
  0x79   :  { %v62_v5 = vpop.permute.xlu0 %61 }
  0x7a   :  { %v74_v14 = vsel %vm73_vm2, %v597_v3, %v62_v5  ;;  %v66_v15 = vpop.permute.xlu1 %65 }
  0x7b   :  { %182 = vmatmul.mubr.f32.vlgmr.msra.gmra.mrb[0].mxu0 %v74_v14  ;;  %v76_v21 = vsel %vm73_vm2, %v614_v8, %v66_v15  ;;  %v266_v8 = vld [vmem:[%s892_s3 + $0x8] sm:$0xff] }
  0x7c   :  { %435 = vmatprep.mubr.msk.f32.mxu0 %vm73_vm2, %v55_v36  ;;  %v275_v36 = vld [vmem:[%s892_s3 + $0x50] sm:$0xff] }
  0x7d   :  { %v64_v16 = vpop.permute.xlu0 %63  ;;  %v495_v38 = vpack.c.bf16 %v276_v37, %v275_v36 }
  0x7e   :  { %v75_v20 = vsel %vm73_vm2, %v600_v4, %v64_v16  ;;  %v68_v3 = vpop.permute.xlu1 %67  ;;  %v265_v4 = vld [vmem:[%s892_s3] sm:$0xff] }
  0x7f   :  { %187 = vmatmul.mubr.f32.gmra.mrb[2].mxu0 %v75_v20  ;;  %v77_v23 = vsel %vm73_vm2, %v617_v9, %v68_v3  ;;  %v267_v9 = vld [vmem:[%s892_s3 + $0x10] sm:$0xff]  ;;  %v480_v24 = vpack.c.bf16 %v266_v8, %v265_v4 }
  0x80   :  { %436 = vmatprep.mubr.msk.f32.mxu0 %vm73_vm2, %v58_v18  ;;  %v483_v26 = vpack.c.bf16 %v268_v25, %v267_v9 }
  0x81   :  { %481 = vmatpush1.bf16.msra.mxu1 %v480_v24 }
  0x82   :  { %482 = vmatprep.subr.bf16.mxu1 %v545_v11 }
  0x83   :  { %192 = vmatmul.mubr.f32.gmra.mrb[4].mxu0 %v76_v21 }
  0x84   :  { %437 = vmatprep.mubr.msk.f32.mxu0 %vm73_vm2, %v60_v22 }
  0x85   :  { %484 = vmatpush1.bf16.msra.mxu1 %v483_v26 }
  0x86   :  { %485 = vmatprep.subr.bf16.mxu1 %v545_v11 }
  0x87   :  { %197 = vmatmul.mubr.f32.gmra.mrb[6].mxu0 %v77_v23 }
  0x89   :  { %487 = vmatpush1.bf16.msra.mxu1 %v486_v29 }
  0x8a   :  { %488 = vmatprep.subr.bf16.mxu1 %v545_v11 }
  0x8d   :  { %490 = vmatpush1.bf16.msra.mxu1 %v489_v32 }
  0x8e   :  { %491 = vmatprep.subr.bf16.mxu1 %v545_v11 }
  0x91   :  { %493 = vmatpush1.bf16.msra.mxu1 %v492_v35 }
  0x92   :  { %494 = vmatprep.subr.bf16.mxu1 %v545_v11 }
  0x95   :  { %496 = vmatpush1.bf16.msra.mxu1 %v495_v38 }
  0x96   :  { %497 = vmatprep.subr.bf16.mxu1 %v545_v11 }
  0x99   :  { %499 = vmatpush1.bf16.msra.mxu1 %v498_v41 }
  0x9a   :  { %500 = vmatprep.subr.bf16.mxu1 %v545_v11 }
  0x9d   :  { %502 = vmatpush1.bf16.msra.mxu1 %v501_v44 }
  0x9e   :  { %503 = vmatprep.subr.bf16.mxu1 %v545_v11 }
  0xa1   :  { %505 = vmatpush1.bf16.msra.mxu1 %v504_v47 }
  0xa2   :  { %506 = vmatprep.subr.bf16.mxu1 %v545_v11 }
  0xa5   :  { %508 = vmatpush1.bf16.msra.mxu1 %v507_v50  ;;  %v395_v50 = vrot.slane %v584_v0, 1  ;;  %v401_v0 = vrot.slane %v611_v7, 1 }
  0xa6   :  { %509 = vmatprep.subr.bf16.mxu1 %v545_v11 }
  0xa7   :  { %v397_v54 = vsel %vm39_vm0, %v395_v50, %v396_v51  ;;  %v404_v7 = vsel %vm39_vm0, %v401_v0, %v403_v2 }
  0xa9   :  { %511 = vmatpush1.bf16.msra.mxu1 %v510_v53 }
  0xaa   :  { %512 = vmatprep.subr.bf16.mxu1 %v545_v11 }
  0xad   :  { %514 = vmatpush1.bf16.msra.mxu1 %v513_v56 }
 0x14e   :  { %v183_v58 = vpop.f32.mrb[0].mxu0 }
 0x14f   :  { %v184_v59 = vadd.f32 %v433_v57, %v183_v58  ;;  %v185_v60 = vpop.f32.mrb[1].mxu0 }
 0x150   :  { %v399_v60 = vsel %vm39_vm0, %v396_v51, %v398_v55 }
 0x151   :  { %v209_v61 = vmax.f32 %v184_v59, 0.0 }
 0x152   :  { %v188_v62 = vpop.f32.mrb[2].mxu0 }
 0x153   :  { %213 = vst.msk [vmem:[#allocation2 + $0x1] sm:$0xff] %vm73_vm2, %v209_v61  ;;  %v189_v63 = vadd.f32 %v433_v57, %v188_v62  ;;  %v190_v5 = vpop.f32.mrb[3].mxu0  ;;  %v400_v61 = vrot.slane %v606_v6, 1 }
 0x155   :  { %v210_v12 = vmax.f32 %v189_v63, 0.0 }
 0x156   :  { %v193_v13 = vpop.f32.mrb[4].mxu0 }
 0x157   :  { %214 = vst.msk [vmem:[#allocation2 + $0x9] sm:$0xff] %vm73_vm2, %v210_v12  ;;  %v194_v14 = vadd.f32 %v433_v57, %v193_v13  ;;  %v195_v11 = vpop.f32.mrb[5].mxu0  ;;  %v402_v12 = vsel %vm39_vm0, %v400_v61, %v401_v0 }
 0x159   :  { %v211_v15 = vmax.f32 %v194_v14, 0.0 }
 0x15a   :  { %v198_v16 = vpop.f32.mrb[6].mxu0  ;;  %v217_v20 = vld [vmem:[#allocation2] sm:$0xff] }
 0x15b   :  { %215 = vst.msk [vmem:[#allocation2 + $0x19] sm:$0xff] %vm73_vm2, %v211_v15  ;;  %v199_v18 = vadd.f32 %v433_v57, %v198_v16  ;;  %v200_v19 = vpop.f32.mrb[7].mxu0  ;;  %v239_v22 = vrot.slane %v217_v20, 2  ;;  %v229_v17 = vrot.slane %v217_v20, 1 }
 0x15d   :  { %v212_v21 = vmax.f32 %v199_v18, 0.0 }
 0x15e   :  { %v218_v3 = vld [vmem:[#allocation2 + $0x8] sm:$0xff]  ;;  %v219_v23 = vld [vmem:[#allocation2 + $0x10] sm:$0x3] }
 0x15f   :  { %216 = vst.msk [vmem:[#allocation2 + $0x21] sm:$0xff] %vm73_vm2, %v212_v21  ;;  %v240_v4 = vrot.slane %v218_v3, 2  ;;  %v230_v8 = vrot.slane %v218_v3, 1  ;;  %v232_v9 = vrot.slane %v219_v23, 1  ;;  %v242_v24 = vrot.slane %v219_v23, 2 }
 0x161   :  { %v241_v25 = vsel %vm50_vm1, %v239_v22, %v240_v4  ;;  %v233_v26 = vsel %vm39_vm0, %v230_v8, %v232_v9  ;;  %v231_v27 = vsel %vm39_vm0, %v229_v17, %v230_v8  ;;  %v243_v28 = vsel %vm50_vm1, %v240_v4, %v242_v24 }
 0x162   :  { %439 = vmatprep.mubr.msk.f32.mxu1 %vm73_vm2, %v241_v25  ;;  %251 = vrot.lane.b32.xlu1 %v233_v26, %s546_s12  ;;  %v220_v29 = vld [vmem:[#allocation2 + $0x18] sm:$0xff] }
 0x163   :  { %249 = vrot.lane.b32.xlu0 %v231_v27, %s546_s12  ;;  %v234_v34 = vrot.slane %v220_v29, 1  ;;  %v244_v41 = vrot.slane %v220_v29, 2 }
 0x166   :  { %v221_v30 = vld [vmem:[#allocation2 + $0x20] sm:$0xff]  ;;  %v222_v31 = vld [vmem:[#allocation2 + $0x28] sm:$0x3] }
 0x167   :  { %v235_v32 = vrot.slane %v221_v30, 1  ;;  %v237_v33 = vrot.slane %v222_v31, 1  ;;  %v245_v40 = vrot.slane %v221_v30, 2  ;;  %v247_v44 = vrot.slane %v222_v31, 2 }
 0x169   :  { %v238_v35 = vsel %vm39_vm0, %v235_v32, %v237_v33  ;;  %v236_v36 = vsel %vm39_vm0, %v234_v34, %v235_v32  ;;  %v246_v43 = vsel %vm50_vm1, %v244_v41, %v245_v40  ;;  %v248_v48 = vsel %vm50_vm1, %v245_v40, %v247_v44 }
 0x16a   :  { %255 = vrot.lane.b32.xlu1 %v238_v35, %s546_s12  ;;  %253 = vrot.lane.b32.xlu0 %v236_v36, %s546_s12  ;;  %s422_s12 = sshll.u32 %s548_s4, 4  ;;  %s423_s12 = int_to_ptr.vmem [resolvable:$true] %s422_s12 }
 0x16b   :  { %s521_s26 = scalar_lea.vmem %s423_s12, 512  ;;  %p526_p1 = scmp.lt.s32.totalorder %s423_s12, %s423_s12 }
 0x16c   :  { %p522_p0 = scmp.ne.s32.totalorder %s423_s12, %s521_s26  ;;  %p527_p2 = scmp.lt.s32.totalorder %s521_s26, %s521_s26 }
 0x16e   :  { %p528_p3 = por %p527_p2, %p526_p1 }
 0x170   :  { %p529_p4 = pnand %p528_p3, %p522_p0 }
 0x1d4   :  { %v252_v39 = vpop.permute.xlu1 %251 }
 0x1d5   :  { %v250_v37 = vpop.permute.xlu0 %249  ;;  %v262_v42 = vsel %vm73_vm2, %v218_v3, %v252_v39 }
 0x1d6   :  { %v261_v38 = vsel %vm73_vm2, %v217_v20, %v250_v37 }
 0x1d7   :  { %369 = vmatmul.mubr.f32.vlgmr.msra.gmra.mrb[0].mxu1 %v261_v38 }
 0x1d8   :  { %440 = vmatprep.mubr.msk.f32.mxu1 %vm73_vm2, %v243_v28 }
 0x1db   :  { %374 = vmatmul.mubr.f32.gmra.mrb[2].mxu1 %v262_v42 }
 0x1dc   :  { %441 = vmatprep.mubr.msk.f32.mxu1 %vm73_vm2, %v246_v43  ;;  %v254_v45 = vpop.permute.xlu0 %253  ;;  %v256_v47 = vpop.permute.xlu1 %255 }
 0x1dd   :  { %v263_v46 = vsel %vm73_vm2, %v220_v29, %v254_v45  ;;  %v264_v49 = vsel %vm73_vm2, %v221_v30, %v256_v47 }
 0x1df   :  { %379 = vmatmul.mubr.f32.gmra.mrb[4].mxu1 %v263_v46 }
 0x1e0   :  { %442 = vmatprep.mubr.msk.f32.mxu1 %vm73_vm2, %v248_v48 }
 0x1e3   :  { %384 = vmatmul.mubr.f32.gmra.mrb[6].mxu1 %v264_v49 }
 0x2aa   :  { %v370_v53 = vpop.f32.mrb[0].mxu1 }
 0x2ab   :  { %v371_v56 = vadd.f32 %v438_v52, %v370_v53  ;;  %v372_v57 = vpop.f32.mrb[1].mxu1 }
 0x2ad   :  { %v409_v58 = vadd.f32 %v397_v54, %v371_v56 }
 0x2ae   :  { %v375_v59 = vpop.f32.mrb[2].mxu1 }
 0x2af   :  { %413 = vst.msk [vmem:[#allocation3] sm:$0xff] %vm73_vm2, %v409_v58  ;;  %v376_v1 = vadd.f32 %v438_v52, %v375_v59  ;;  %v377_v62 = vpop.f32.mrb[3].mxu1 }
 0x2b1   :  { %v410_v63 = vadd.f32 %v399_v60, %v376_v1 }
 0x2b2   :  { %v380_v5 = vpop.f32.mrb[4].mxu1 }
 0x2b3   :  { %414 = vst.msk [vmem:[#allocation3 + $0x8] sm:$0xff] %vm73_vm2, %v410_v63  ;;  %v381_v13 = vadd.f32 %v438_v52, %v380_v5  ;;  %v382_v14 = vpop.f32.mrb[5].mxu1 }
 0x2b5   :  { %v411_v11 = vadd.f32 %v402_v12, %v381_v13 }
 0x2b6   :  { %v385_v6 = vpop.f32.mrb[6].mxu1 }
 0x2b7   :  { %415 = vst.msk [vmem:[#allocation3 + $0x10] sm:$0xff] %vm73_vm2, %v411_v11  ;;  %v386_v15 = vadd.f32 %v438_v52, %v385_v6  ;;  %v387_v16 = vpop.f32.mrb[7].mxu1 }
 0x2b9   :  { %v412_v18 = vadd.f32 %v404_v7, %v386_v15 }
 0x2bb   :  { %416 = vst.msk [vmem:[#allocation3 + $0x18] sm:$0xff] %vm73_vm2, %v412_v18 }
 0x2bc   :  { %532 = shalt.err (!%p529_p4)
}
 0x2bd   :  { %s533_s28 = scalar_lea.hbm %s894_s5, 512 }
 0x2be   :  { %p534_p5 = scmp.ne.s32.totalorder %s894_s5, %s533_s28  ;;  %p537_p6 = scmp.lt.u32.totalorder %s533_s28, %s894_s5 }
 0x2c0   :  { %p539_p7 = pnand %p537_p6, %p534_p5 }
 0x2c2   :  { %542 = shalt.err (!%p539_p7)
}
 0x2c3   :  { %s549_s8 = smov 128   ;;  %s550_s0 = smov 8  }
 0x2c4   :  { %428 = dma.vmem_to_hbm [thread:$0]  %s423_s12, 512, %s894_s5, [#allocation4], %s549_s8, %s549_s8, %s550_s0  }
 0x2c5   :  { %543 = dma.done.wait [#allocation4], 512  }
 0x2c6   :  { %544 = vsyncadd [#allocation4], 4294966784 }
 0x2c7   :  { %432 = vsyncpa [#allocation4], 1 }

</bundles_post_ra>
